<compile_context>
chip_gen: v7x
topology: tpu7x:2x2x1
jax: 0.10.0
libtpu: 0.0.40
codegen_flags: <defaults>
</compile_context>

<pallas_src>
import functools

import jax
import jax.numpy as jnp
from jax import lax
from jax.experimental import pallas as pl
from jax.experimental.pallas import tpu as pltpu


# ------------------------------ Pallas kernel -------------------------------
def _attn_kernel(x_ref, wproj_ref, bu_ref, o_ref, *, heads, t, e, bb, mask):
    """bb batch items per grid step: fused projection + per-head attention + unify accumulation."""
    s = e // heads

    x = x_ref[...].astype(jnp.bfloat16)                                  # (bb*t, e)
    # Single MXU matmul producing Q, K and the Wu-folded per-head V slabs (bf16 in, f32 acc).
    proj = jnp.dot(x, wproj_ref[...], preferred_element_type=jnp.float32)  # (bb*t, 2e + heads*e)
    bu = bu_ref[...]                                                     # (1, e) f32

    if mask:
        # Hoisted out of the per-head loop (JAX does not CSE broadcast_in_dim).
        row_ids = lax.broadcasted_iota(jnp.int32, (t, t), 0)
        col_ids = lax.broadcasted_iota(jnp.int32, (t, t), 1)

    outs = []
    for bi in range(bb):                                                 # static unroll, tiny bb
        blk = proj[bi * t:(bi + 1) * t, :]                               # (t, 2e + heads*e) f32
        q = blk[:, :e].astype(jnp.bfloat16)                              # 1/e^(1/4) already folded
        k = blk[:, e:2 * e].astype(jnp.bfloat16)
        vu = blk[:, 2 * e:].astype(jnp.bfloat16)                         # (t, heads*e)

        acc = jnp.zeros((t, e), jnp.float32)
        for hd in range(heads):
            lo = hd * s
            qh = q[:, lo:lo + s]                                         # (t, s)
            kh = k[:, lo:lo + s]                                         # (t, s)
            logit = lax.dot_general(qh, kh, (((1,), (1,)), ((), ())),
                                    preferred_element_type=jnp.float32)  # (t, t)
            if mask:
                # TODO(synk): external mask_() helper is not in the snippet; assumed strictly
                #             upper-triangular (mask_diagonal=False). Finite fill avoids NaNs.
                logit = jnp.where(col_ids > row_ids, jnp.float32(-1e30), logit)
            m = jnp.max(logit, axis=-1, keepdims=True)
            p = jnp.exp(logit - m)
            inv = pl.reciprocal(jnp.sum(p, axis=-1, keepdims=True), approx=True)
            pn = (p * inv).astype(jnp.bfloat16)
            # vu already contains V @ Wu^T for this head -> accumulate straight into (t, e).
            acc = acc + jnp.dot(pn, vu[:, hd * e:(hd + 1) * e],
                                preferred_element_type=jnp.float32)
        outs.append(acc + bu)

    y = outs[0] if bb == 1 else jnp.concatenate(outs, axis=0)            # (bb*t, e), single store
    o_ref[...] = y.astype(o_ref.dtype)


# ------------------------------ host-side folding ----------------------------
def fold_params(params, heads, dtype=jnp.bfloat16):
    """One-time weight folding; call ONCE at init, not inside the per-call forward path."""
    s = params['wq'].shape[0]
    e = params['wu'].shape[0]
    assert e == heads * s
    scale = 1.0 / (float(e) ** 0.25)
    eye_h = jnp.eye(heads, dtype=jnp.float32)
    wq_bd = jnp.kron(eye_h, params['wq'].T) * scale                      # (e, e), Q scale folded
    wk_bd = jnp.kron(eye_h, params['wk'].T) * scale                      # (e, e), K scale folded
    wv_bd = jnp.kron(eye_h, params['wv'].T)                              # (e, e)
    wu_t = params['wu'].T                                                # (e, e)
    # Fold unifyheads into V: ctx @ Wu^T == sum_h attn_h @ (x @ (wv_bd[:,h] @ wu_t[h,:])).
    w_vu = jnp.concatenate(
        [wv_bd[:, h * s:(h + 1) * s] @ wu_t[h * s:(h + 1) * s, :] for h in range(heads)],
        axis=1)                                                          # (e, heads*e)
    w_proj = jnp.concatenate([wq_bd, wk_bd, w_vu], axis=1).astype(dtype)  # (e, 2e + heads*e)
    return {'w_proj': w_proj, 'bu': params['bu'].reshape(1, e).astype(jnp.float32)}


# ------------------------------ forward wrapper ------------------------------
def self_attention_narrow(x, folded, *, heads, mask=False):
    """Forward pass of SelfAttentionNarrow.  x: (b, t, e) float32; folded = fold_params(...)."""
    b, t, e = x.shape
    assert e % heads == 0, (e, heads)
    w_proj, bu = folded['w_proj'], folded['bu']
    assert w_proj.shape == (e, 2 * e + heads * e)

    # At most 2 grid steps: 2 "parallel" steps keep both v7x TensorCores busy; on single-TC
    # v5e/v6e this costs at most one extra ~0.35us step versus a fully collapsed grid.
    n_steps = 2 if (b >= 2 and b % 2 == 0 and ((b // 2) * t) % 8 == 0) else 1
    bb = b // n_steps
    rows = bb * t

    x2 = x.reshape(b * t, e)   # flatten batch*time so each step is one dense projection matmul

    kernel = functools.partial(_attn_kernel, heads=heads, t=t, e=e, bb=bb, mask=mask)
    # TODO(synk): if e grows past ~1k, guard resident-weight VMEM on v7x (single-buffer the
    #             constant-index weight block / add a K-tiled "arbitrary" axis).
    out = pl.pallas_call(
        kernel,
        out_shape=jax.ShapeDtypeStruct((b * t, e), x.dtype),
        grid=(n_steps,),
        in_specs=[
            pl.BlockSpec((rows, e), lambda i: (i, 0)),                  # activations per step
            pl.BlockSpec((e, 2 * e + heads * e), lambda i: (0, 0)),     # folded bf16 weights (resident)
            pl.BlockSpec((1, e), lambda i: (0, 0)),                     # unify bias
        ],
        out_specs=pl.BlockSpec((rows, e), lambda i: (i, 0)),
        compiler_params=pltpu.CompilerParams(dimension_semantics=("parallel",)),
    )(x2, w_proj, bu)
    return out.reshape(b, t, e)


# ------------------------------ pure-JAX reference --------------------------
def reference(x, p, heads, mask=False):
    b, t, e = x.shape
    s = e // heads
    x4 = x.reshape(b, t, heads, s)
    keys = x4 @ p['wk'].T
    queries = x4 @ p['wq'].T
    values = x4 @ p['wv'].T
    keys = keys.transpose(0, 2, 1, 3).reshape(b * heads, t, s)
    queries = queries.transpose(0, 2, 1, 3).reshape(b * heads, t, s)
    values = values.transpose(0, 2, 1, 3).reshape(b * heads, t, s)
    scale = float(e) ** 0.25
    queries = queries / scale
    keys = keys / scale
    dot = jnp.einsum('bqs,bks->bqk', queries, keys)
    if mask:
        r = lax.broadcasted_iota(jnp.int32, (t, t), 0)
        c = lax.broadcasted_iota(jnp.int32, (t, t), 1)
        dot = jnp.where(c > r, -jnp.inf, dot)
    dot = jax.nn.softmax(dot, axis=2)
    out = jnp.einsum('bqk,bks->bqs', dot, values).reshape(b, heads, t, s)
    out = out.transpose(0, 2, 1, 3).reshape(b, t, heads * s)
    return out @ p['wu'].T + p['bu']


# ------------------------------ parameter init -------------------------------
def init_params(key, emb, heads):
    s = emb // heads
    k1, k2, k3, k4, k5 = jax.random.split(key, 5)

    def lin(k, shape, fan_in):
        return jax.random.normal(k, shape, jnp.float32) / jnp.sqrt(float(fan_in))

    return {
        'wq': lin(k1, (s, s), s),        # torch Linear weight layout: (out, in)
        'wk': lin(k2, (s, s), s),
        'wv': lin(k3, (s, s), s),
        'wu': lin(k4, (emb, emb), emb),
        'bu': lin(k5, (emb,), emb),
    }


# ----------------------------------- main ------------------------------------
if __name__ == "__main__":
    EMB, HEADS = 32, 8      # s = 4
    B, T = 2, 8

    root = jax.random.PRNGKey(0)
    k_params, k_data = jax.random.split(root)
    params = init_params(k_params, EMB, HEADS)
    x = jax.random.normal(k_data, (B, T, EMB), jnp.float32)

    folded = fold_params(params, HEADS)     # one-time folding, outside the jitted forward

    fwd = jax.jit(functools.partial(self_attention_narrow, heads=HEADS, mask=False))
    out = jax.block_until_ready(fwd(x, folded))

    ref = reference(x, params, HEADS, mask=False)
    assert out.shape == (B, T, EMB), out.shape
    assert bool(jnp.all(jnp.isfinite(out)))
    max_err = float(jnp.max(jnp.abs(out - ref)))
    # bf16 weights/operands with f32 accumulation: slightly looser tolerance than pure f32.
    assert bool(jnp.allclose(out, ref, atol=3e-2, rtol=3e-2)), max_err
    print("KERNEL_OK")
</pallas_src>

<mosaic_0001>
module attributes {stable_mosaic.version = 11 : i64} {
  func.func @_attn_kernel(%arg0: i32, %arg1: memref<8x32xf32, #tpu.memory_space<vmem>>, %arg2: memref<32x320xbf16, #tpu.memory_space<vmem>>, %arg3: memref<1x32xf32, #tpu.memory_space<vmem>>, %arg4: memref<8x32xf32, #tpu.memory_space<vmem>>) attributes {dimension_semantics = [#tpu.dimension_semantics<parallel>], iteration_bounds = array<i64: 2>, scalar_prefetch = 0 : i64, scratch_operands = 0 : i64, tpu.core_type = #tpu.core_type<tc>, window_params = [{transform_indices = @transform_0, window_bounds = array<i64: 8, 32>}, {pipeline_mode = #tpu.pipeline_mode<synchronous>, transform_indices = @transform_1, window_bounds = array<i64: 32, 320>}, {pipeline_mode = #tpu.pipeline_mode<synchronous>, transform_indices = @transform_2, window_bounds = array<i64: 1, 32>}, {transform_indices = @transform_3, window_bounds = array<i64: 8, 32>}]} {
    %c0 = arith.constant 0 : index
    %c0_0 = arith.constant 0 : index
    %0 = vector.load %arg1[%c0, %c0_0] : memref<8x32xf32, #tpu.memory_space<vmem>>, vector<8x32xf32>
    %1 = arith.truncf %0 : vector<8x32xf32> to vector<8x32xbf16>
    %c0_1 = arith.constant 0 : index
    %c0_2 = arith.constant 0 : index
    %2 = vector.load %arg2[%c0_1, %c0_2] : memref<32x320xbf16, #tpu.memory_space<vmem>>, vector<32x320xbf16>
    %cst = arith.constant dense<0.000000e+00> : vector<8x320xf32>
    %3 = tpu.matmul %1, %2, %cst {dimension_numbers = #tpu.dot_dimension_numbers<[1], [0], [0], [1], [0, 0, 1, 1], [], []>} : vector<8x32xbf16>, vector<32x320xbf16>, vector<8x320xf32> -> vector<8x320xf32>
    %c0_3 = arith.constant 0 : index
    %c0_4 = arith.constant 0 : index
    %4 = vector.load %arg3[%c0_3, %c0_4] : memref<1x32xf32, #tpu.memory_space<vmem>>, vector<1x32xf32>
    %5 = vector.extract_strided_slice %3 {offsets = [0, 0], sizes = [8, 32], strides = [1, 1]} : vector<8x320xf32> to vector<8x32xf32>
    %6 = arith.truncf %5 : vector<8x32xf32> to vector<8x32xbf16>
    %7 = vector.extract_strided_slice %3 {offsets = [0, 32], sizes = [8, 32], strides = [1, 1]} : vector<8x320xf32> to vector<8x32xf32>
    %8 = arith.truncf %7 : vector<8x32xf32> to vector<8x32xbf16>
    %9 = vector.extract_strided_slice %3 {offsets = [0, 64], sizes = [8, 256], strides = [1, 1]} : vector<8x320xf32> to vector<8x256xf32>
    %10 = arith.truncf %9 : vector<8x256xf32> to vector<8x256xbf16>
    %cst_5 = arith.constant 0.000000e+00 : f32
    %11 = vector.broadcast %cst_5 : f32 to vector<8x32xf32>
    %12 = vector.extract_strided_slice %6 {offsets = [0, 0], sizes = [8, 4], strides = [1, 1]} : vector<8x32xbf16> to vector<8x4xbf16>
    %13 = vector.extract_strided_slice %8 {offsets = [0, 0], sizes = [8, 4], strides = [1, 1]} : vector<8x32xbf16> to vector<8x4xbf16>
    %cst_6 = arith.constant dense<0.000000e+00> : vector<8x8xf32>
    %14 = tpu.matmul %12, %13, %cst_6 {dimension_numbers = #tpu.dot_dimension_numbers<[1], [1], [0], [0], [0, 0, 1, 0], [], []>} : vector<8x4xbf16>, vector<8x4xbf16>, vector<8x8xf32> -> vector<8x8xf32>
    %cst_7 = arith.constant dense<0xFF800000> : vector<8xf32>
    %15 = vector.multi_reduction <maximumf>, %14, %cst_7 [1] : vector<8x8xf32> to vector<8xf32>
    %16 = vector.shape_cast %15 : vector<8xf32> to vector<8x1xf32>
    %17 = vector.broadcast %16 : vector<8x1xf32> to vector<8x8xf32>
    %18 = arith.subf %14, %17 : vector<8x8xf32>
    %19 = math.exp %18 : vector<8x8xf32>
    %cst_8 = arith.constant dense<0.000000e+00> : vector<8xf32>
    %20 = vector.multi_reduction <add>, %19, %cst_8 [1] : vector<8x8xf32> to vector<8xf32>
    %21 = vector.shape_cast %20 : vector<8xf32> to vector<8x1xf32>
    %22 = tpu.reciprocal %21 {approx = true} : vector<8x1xf32> -> vector<8x1xf32>
    %23 = vector.broadcast %22 : vector<8x1xf32> to vector<8x8xf32>
    %24 = arith.mulf %19, %23 : vector<8x8xf32>
    %25 = arith.truncf %24 : vector<8x8xf32> to vector<8x8xbf16>
    %26 = vector.extract_strided_slice %10 {offsets = [0, 0], sizes = [8, 32], strides = [1, 1]} : vector<8x256xbf16> to vector<8x32xbf16>
    %cst_9 = arith.constant dense<0.000000e+00> : vector<8x32xf32>
    %27 = tpu.matmul %25, %26, %cst_9 {dimension_numbers = #tpu.dot_dimension_numbers<[1], [0], [0], [1], [0, 0, 1, 1], [], []>} : vector<8x8xbf16>, vector<8x32xbf16>, vector<8x32xf32> -> vector<8x32xf32>
    %28 = arith.addf %11, %27 : vector<8x32xf32>
    %29 = vector.extract_strided_slice %6 {offsets = [0, 4], sizes = [8, 4], strides = [1, 1]} : vector<8x32xbf16> to vector<8x4xbf16>
    %30 = vector.extract_strided_slice %8 {offsets = [0, 4], sizes = [8, 4], strides = [1, 1]} : vector<8x32xbf16> to vector<8x4xbf16>
    %cst_10 = arith.constant dense<0.000000e+00> : vector<8x8xf32>
    %31 = tpu.matmul %29, %30, %cst_10 {dimension_numbers = #tpu.dot_dimension_numbers<[1], [1], [0], [0], [0, 0, 1, 0], [], []>} : vector<8x4xbf16>, vector<8x4xbf16>, vector<8x8xf32> -> vector<8x8xf32>
    %cst_11 = arith.constant dense<0xFF800000> : vector<8xf32>
    %32 = vector.multi_reduction <maximumf>, %31, %cst_11 [1] : vector<8x8xf32> to vector<8xf32>
    %33 = vector.shape_cast %32 : vector<8xf32> to vector<8x1xf32>
    %34 = vector.broadcast %33 : vector<8x1xf32> to vector<8x8xf32>
    %35 = arith.subf %31, %34 : vector<8x8xf32>
    %36 = math.exp %35 : vector<8x8xf32>
    %cst_12 = arith.constant dense<0.000000e+00> : vector<8xf32>
    %37 = vector.multi_reduction <add>, %36, %cst_12 [1] : vector<8x8xf32> to vector<8xf32>
    %38 = vector.shape_cast %37 : vector<8xf32> to vector<8x1xf32>
    %39 = tpu.reciprocal %38 {approx = true} : vector<8x1xf32> -> vector<8x1xf32>
    %40 = vector.broadcast %39 : vector<8x1xf32> to vector<8x8xf32>
    %41 = arith.mulf %36, %40 : vector<8x8xf32>
    %42 = arith.truncf %41 : vector<8x8xf32> to vector<8x8xbf16>
    %43 = vector.extract_strided_slice %10 {offsets = [0, 32], sizes = [8, 32], strides = [1, 1]} : vector<8x256xbf16> to vector<8x32xbf16>
    %cst_13 = arith.constant dense<0.000000e+00> : vector<8x32xf32>
    %44 = tpu.matmul %42, %43, %cst_13 {dimension_numbers = #tpu.dot_dimension_numbers<[1], [0], [0], [1], [0, 0, 1, 1], [], []>} : vector<8x8xbf16>, vector<8x32xbf16>, vector<8x32xf32> -> vector<8x32xf32>
    %45 = arith.addf %28, %44 : vector<8x32xf32>
    %46 = vector.extract_strided_slice %6 {offsets = [0, 8], sizes = [8, 4], strides = [1, 1]} : vector<8x32xbf16> to vector<8x4xbf16>
    %47 = vector.extract_strided_slice %8 {offsets = [0, 8], sizes = [8, 4], strides = [1, 1]} : vector<8x32xbf16> to vector<8x4xbf16>
    %cst_14 = arith.constant dense<0.000000e+00> : vector<8x8xf32>
    %48 = tpu.matmul %46, %47, %cst_14 {dimension_numbers = #tpu.dot_dimension_numbers<[1], [1], [0], [0], [0, 0, 1, 0], [], []>} : vector<8x4xbf16>, vector<8x4xbf16>, vector<8x8xf32> -> vector<8x8xf32>
    %cst_15 = arith.constant dense<0xFF800000> : vector<8xf32>
    %49 = vector.multi_reduction <maximumf>, %48, %cst_15 [1] : vector<8x8xf32> to vector<8xf32>
    %50 = vector.shape_cast %49 : vector<8xf32> to vector<8x1xf32>
    %51 = vector.broadcast %50 : vector<8x1xf32> to vector<8x8xf32>
    %52 = arith.subf %48, %51 : vector<8x8xf32>
    %53 = math.exp %52 : vector<8x8xf32>
    %cst_16 = arith.constant dense<0.000000e+00> : vector<8xf32>
    %54 = vector.multi_reduction <add>, %53, %cst_16 [1] : vector<8x8xf32> to vector<8xf32>
    %55 = vector.shape_cast %54 : vector<8xf32> to vector<8x1xf32>
    %56 = tpu.reciprocal %55 {approx = true} : vector<8x1xf32> -> vector<8x1xf32>
    %57 = vector.broadcast %56 : vector<8x1xf32> to vector<8x8xf32>
    %58 = arith.mulf %53, %57 : vector<8x8xf32>
    %59 = arith.truncf %58 : vector<8x8xf32> to vector<8x8xbf16>
    %60 = vector.extract_strided_slice %10 {offsets = [0, 64], sizes = [8, 32], strides = [1, 1]} : vector<8x256xbf16> to vector<8x32xbf16>
    %cst_17 = arith.constant dense<0.000000e+00> : vector<8x32xf32>
    %61 = tpu.matmul %59, %60, %cst_17 {dimension_numbers = #tpu.dot_dimension_numbers<[1], [0], [0], [1], [0, 0, 1, 1], [], []>} : vector<8x8xbf16>, vector<8x32xbf16>, vector<8x32xf32> -> vector<8x32xf32>
    %62 = arith.addf %45, %61 : vector<8x32xf32>
    %63 = vector.extract_strided_slice %6 {offsets = [0, 12], sizes = [8, 4], strides = [1, 1]} : vector<8x32xbf16> to vector<8x4xbf16>
    %64 = vector.extract_strided_slice %8 {offsets = [0, 12], sizes = [8, 4], strides = [1, 1]} : vector<8x32xbf16> to vector<8x4xbf16>
    %cst_18 = arith.constant dense<0.000000e+00> : vector<8x8xf32>
    %65 = tpu.matmul %63, %64, %cst_18 {dimension_numbers = #tpu.dot_dimension_numbers<[1], [1], [0], [0], [0, 0, 1, 0], [], []>} : vector<8x4xbf16>, vector<8x4xbf16>, vector<8x8xf32> -> vector<8x8xf32>
    %cst_19 = arith.constant dense<0xFF800000> : vector<8xf32>
    %66 = vector.multi_reduction <maximumf>, %65, %cst_19 [1] : vector<8x8xf32> to vector<8xf32>
    %67 = vector.shape_cast %66 : vector<8xf32> to vector<8x1xf32>
    %68 = vector.broadcast %67 : vector<8x1xf32> to vector<8x8xf32>
    %69 = arith.subf %65, %68 : vector<8x8xf32>
    %70 = math.exp %69 : vector<8x8xf32>
    %cst_20 = arith.constant dense<0.000000e+00> : vector<8xf32>
    %71 = vector.multi_reduction <add>, %70, %cst_20 [1] : vector<8x8xf32> to vector<8xf32>
    %72 = vector.shape_cast %71 : vector<8xf32> to vector<8x1xf32>
    %73 = tpu.reciprocal %72 {approx = true} : vector<8x1xf32> -> vector<8x1xf32>
    %74 = vector.broadcast %73 : vector<8x1xf32> to vector<8x8xf32>
    %75 = arith.mulf %70, %74 : vector<8x8xf32>
    %76 = arith.truncf %75 : vector<8x8xf32> to vector<8x8xbf16>
    %77 = vector.extract_strided_slice %10 {offsets = [0, 96], sizes = [8, 32], strides = [1, 1]} : vector<8x256xbf16> to vector<8x32xbf16>
    %cst_21 = arith.constant dense<0.000000e+00> : vector<8x32xf32>
    %78 = tpu.matmul %76, %77, %cst_21 {dimension_numbers = #tpu.dot_dimension_numbers<[1], [0], [0], [1], [0, 0, 1, 1], [], []>} : vector<8x8xbf16>, vector<8x32xbf16>, vector<8x32xf32> -> vector<8x32xf32>
    %79 = arith.addf %62, %78 : vector<8x32xf32>
    %80 = vector.extract_strided_slice %6 {offsets = [0, 16], sizes = [8, 4], strides = [1, 1]} : vector<8x32xbf16> to vector<8x4xbf16>
    %81 = vector.extract_strided_slice %8 {offsets = [0, 16], sizes = [8, 4], strides = [1, 1]} : vector<8x32xbf16> to vector<8x4xbf16>
    %cst_22 = arith.constant dense<0.000000e+00> : vector<8x8xf32>
    %82 = tpu.matmul %80, %81, %cst_22 {dimension_numbers = #tpu.dot_dimension_numbers<[1], [1], [0], [0], [0, 0, 1, 0], [], []>} : vector<8x4xbf16>, vector<8x4xbf16>, vector<8x8xf32> -> vector<8x8xf32>
    %cst_23 = arith.constant dense<0xFF800000> : vector<8xf32>
    %83 = vector.multi_reduction <maximumf>, %82, %cst_23 [1] : vector<8x8xf32> to vector<8xf32>
    %84 = vector.shape_cast %83 : vector<8xf32> to vector<8x1xf32>
    %85 = vector.broadcast %84 : vector<8x1xf32> to vector<8x8xf32>
    %86 = arith.subf %82, %85 : vector<8x8xf32>
    %87 = math.exp %86 : vector<8x8xf32>
    %cst_24 = arith.constant dense<0.000000e+00> : vector<8xf32>
    %88 = vector.multi_reduction <add>, %87, %cst_24 [1] : vector<8x8xf32> to vector<8xf32>
    %89 = vector.shape_cast %88 : vector<8xf32> to vector<8x1xf32>
    %90 = tpu.reciprocal %89 {approx = true} : vector<8x1xf32> -> vector<8x1xf32>
    %91 = vector.broadcast %90 : vector<8x1xf32> to vector<8x8xf32>
    %92 = arith.mulf %87, %91 : vector<8x8xf32>
    %93 = arith.truncf %92 : vector<8x8xf32> to vector<8x8xbf16>
    %94 = vector.extract_strided_slice %10 {offsets = [0, 128], sizes = [8, 32], strides = [1, 1]} : vector<8x256xbf16> to vector<8x32xbf16>
    %cst_25 = arith.constant dense<0.000000e+00> : vector<8x32xf32>
    %95 = tpu.matmul %93, %94, %cst_25 {dimension_numbers = #tpu.dot_dimension_numbers<[1], [0], [0], [1], [0, 0, 1, 1], [], []>} : vector<8x8xbf16>, vector<8x32xbf16>, vector<8x32xf32> -> vector<8x32xf32>
    %96 = arith.addf %79, %95 : vector<8x32xf32>
    %97 = vector.extract_strided_slice %6 {offsets = [0, 20], sizes = [8, 4], strides = [1, 1]} : vector<8x32xbf16> to vector<8x4xbf16>
    %98 = vector.extract_strided_slice %8 {offsets = [0, 20], sizes = [8, 4], strides = [1, 1]} : vector<8x32xbf16> to vector<8x4xbf16>
    %cst_26 = arith.constant dense<0.000000e+00> : vector<8x8xf32>
    %99 = tpu.matmul %97, %98, %cst_26 {dimension_numbers = #tpu.dot_dimension_numbers<[1], [1], [0], [0], [0, 0, 1, 0], [], []>} : vector<8x4xbf16>, vector<8x4xbf16>, vector<8x8xf32> -> vector<8x8xf32>
    %cst_27 = arith.constant dense<0xFF800000> : vector<8xf32>
    %100 = vector.multi_reduction <maximumf>, %99, %cst_27 [1] : vector<8x8xf32> to vector<8xf32>
    %101 = vector.shape_cast %100 : vector<8xf32> to vector<8x1xf32>
    %102 = vector.broadcast %101 : vector<8x1xf32> to vector<8x8xf32>
    %103 = arith.subf %99, %102 : vector<8x8xf32>
    %104 = math.exp %103 : vector<8x8xf32>
    %cst_28 = arith.constant dense<0.000000e+00> : vector<8xf32>
    %105 = vector.multi_reduction <add>, %104, %cst_28 [1] : vector<8x8xf32> to vector<8xf32>
    %106 = vector.shape_cast %105 : vector<8xf32> to vector<8x1xf32>
    %107 = tpu.reciprocal %106 {approx = true} : vector<8x1xf32> -> vector<8x1xf32>
    %108 = vector.broadcast %107 : vector<8x1xf32> to vector<8x8xf32>
    %109 = arith.mulf %104, %108 : vector<8x8xf32>
    %110 = arith.truncf %109 : vector<8x8xf32> to vector<8x8xbf16>
    %111 = vector.extract_strided_slice %10 {offsets = [0, 160], sizes = [8, 32], strides = [1, 1]} : vector<8x256xbf16> to vector<8x32xbf16>
    %cst_29 = arith.constant dense<0.000000e+00> : vector<8x32xf32>
    %112 = tpu.matmul %110, %111, %cst_29 {dimension_numbers = #tpu.dot_dimension_numbers<[1], [0], [0], [1], [0, 0, 1, 1], [], []>} : vector<8x8xbf16>, vector<8x32xbf16>, vector<8x32xf32> -> vector<8x32xf32>
    %113 = arith.addf %96, %112 : vector<8x32xf32>
    %114 = vector.extract_strided_slice %6 {offsets = [0, 24], sizes = [8, 4], strides = [1, 1]} : vector<8x32xbf16> to vector<8x4xbf16>
    %115 = vector.extract_strided_slice %8 {offsets = [0, 24], sizes = [8, 4], strides = [1, 1]} : vector<8x32xbf16> to vector<8x4xbf16>
    %cst_30 = arith.constant dense<0.000000e+00> : vector<8x8xf32>
    %116 = tpu.matmul %114, %115, %cst_30 {dimension_numbers = #tpu.dot_dimension_numbers<[1], [1], [0], [0], [0, 0, 1, 0], [], []>} : vector<8x4xbf16>, vector<8x4xbf16>, vector<8x8xf32> -> vector<8x8xf32>
    %cst_31 = arith.constant dense<0xFF800000> : vector<8xf32>
    %117 = vector.multi_reduction <maximumf>, %116, %cst_31 [1] : vector<8x8xf32> to vector<8xf32>
    %118 = vector.shape_cast %117 : vector<8xf32> to vector<8x1xf32>
    %119 = vector.broadcast %118 : vector<8x1xf32> to vector<8x8xf32>
    %120 = arith.subf %116, %119 : vector<8x8xf32>
    %121 = math.exp %120 : vector<8x8xf32>
    %cst_32 = arith.constant dense<0.000000e+00> : vector<8xf32>
    %122 = vector.multi_reduction <add>, %121, %cst_32 [1] : vector<8x8xf32> to vector<8xf32>
    %123 = vector.shape_cast %122 : vector<8xf32> to vector<8x1xf32>
    %124 = tpu.reciprocal %123 {approx = true} : vector<8x1xf32> -> vector<8x1xf32>
    %125 = vector.broadcast %124 : vector<8x1xf32> to vector<8x8xf32>
    %126 = arith.mulf %121, %125 : vector<8x8xf32>
    %127 = arith.truncf %126 : vector<8x8xf32> to vector<8x8xbf16>
    %128 = vector.extract_strided_slice %10 {offsets = [0, 192], sizes = [8, 32], strides = [1, 1]} : vector<8x256xbf16> to vector<8x32xbf16>
    %cst_33 = arith.constant dense<0.000000e+00> : vector<8x32xf32>
    %129 = tpu.matmul %127, %128, %cst_33 {dimension_numbers = #tpu.dot_dimension_numbers<[1], [0], [0], [1], [0, 0, 1, 1], [], []>} : vector<8x8xbf16>, vector<8x32xbf16>, vector<8x32xf32> -> vector<8x32xf32>
    %130 = arith.addf %113, %129 : vector<8x32xf32>
    %131 = vector.extract_strided_slice %6 {offsets = [0, 28], sizes = [8, 4], strides = [1, 1]} : vector<8x32xbf16> to vector<8x4xbf16>
    %132 = vector.extract_strided_slice %8 {offsets = [0, 28], sizes = [8, 4], strides = [1, 1]} : vector<8x32xbf16> to vector<8x4xbf16>
    %cst_34 = arith.constant dense<0.000000e+00> : vector<8x8xf32>
    %133 = tpu.matmul %131, %132, %cst_34 {dimension_numbers = #tpu.dot_dimension_numbers<[1], [1], [0], [0], [0, 0, 1, 0], [], []>} : vector<8x4xbf16>, vector<8x4xbf16>, vector<8x8xf32> -> vector<8x8xf32>
    %cst_35 = arith.constant dense<0xFF800000> : vector<8xf32>
    %134 = vector.multi_reduction <maximumf>, %133, %cst_35 [1] : vector<8x8xf32> to vector<8xf32>
    %135 = vector.shape_cast %134 : vector<8xf32> to vector<8x1xf32>
    %136 = vector.broadcast %135 : vector<8x1xf32> to vector<8x8xf32>
    %137 = arith.subf %133, %136 : vector<8x8xf32>
    %138 = math.exp %137 : vector<8x8xf32>
    %cst_36 = arith.constant dense<0.000000e+00> : vector<8xf32>
    %139 = vector.multi_reduction <add>, %138, %cst_36 [1] : vector<8x8xf32> to vector<8xf32>
    %140 = vector.shape_cast %139 : vector<8xf32> to vector<8x1xf32>
    %141 = tpu.reciprocal %140 {approx = true} : vector<8x1xf32> -> vector<8x1xf32>
    %142 = vector.broadcast %141 : vector<8x1xf32> to vector<8x8xf32>
    %143 = arith.mulf %138, %142 : vector<8x8xf32>
    %144 = arith.truncf %143 : vector<8x8xf32> to vector<8x8xbf16>
    %145 = vector.extract_strided_slice %10 {offsets = [0, 224], sizes = [8, 32], strides = [1, 1]} : vector<8x256xbf16> to vector<8x32xbf16>
    %cst_37 = arith.constant dense<0.000000e+00> : vector<8x32xf32>
    %146 = tpu.matmul %144, %145, %cst_37 {dimension_numbers = #tpu.dot_dimension_numbers<[1], [0], [0], [1], [0, 0, 1, 1], [], []>} : vector<8x8xbf16>, vector<8x32xbf16>, vector<8x32xf32> -> vector<8x32xf32>
    %147 = arith.addf %130, %146 : vector<8x32xf32>
    %148 = vector.broadcast %4 : vector<1x32xf32> to vector<8x32xf32>
    %149 = arith.addf %147, %148 : vector<8x32xf32>
    %c0_38 = arith.constant 0 : index
    %c0_39 = arith.constant 0 : index
    %150 = vector.load %arg4[%c0_38, %c0_39] : memref<8x32xf32, #tpu.memory_space<vmem>>, vector<8x32xf32>
    tpu.vector_store %arg4[%c0_38, %c0_39], %149 {strides = array<i32>} : memref<8x32xf32, #tpu.memory_space<vmem>>, vector<8x32xf32>,
    return
  }
  func.func @transform_0(%arg0: i32) -> (i32, i32) {
    %c0_i32 = arith.constant 0 : i32
    %c0_i32_0 = arith.constant 0 : i32
    return %arg0, %c0_i32 : i32, i32
  }
  func.func @transform_1(%arg0: i32) -> (i32, i32) {
    %c0_i32 = arith.constant 0 : i32
    %c0_i32_0 = arith.constant 0 : i32
    %c0_i32_1 = arith.constant 0 : i32
    return %c0_i32, %c0_i32_0 : i32, i32
  }
  func.func @transform_2(%arg0: i32) -> (i32, i32) {
    %c0_i32 = arith.constant 0 : i32
    %c0_i32_0 = arith.constant 0 : i32
    %c0_i32_1 = arith.constant 0 : i32
    return %c0_i32, %c0_i32_0 : i32, i32
  }
  func.func @transform_3(%arg0: i32) -> (i32, i32) {
    %c0_i32 = arith.constant 0 : i32
    %c0_i32_0 = arith.constant 0 : i32
    return %arg0, %c0_i32 : i32, i32
  }
}

</mosaic_0001>

<bundles_post_ra>
// kernel: self_attention_narrow.1
= control target key start
LH: loop header
LB: loop body
LE: loop exit
PB: predicated region body
PF: predicated region fallthrough
CT: control target
= control target key end

     0   :  { %8 = vsyncpa [#allocation3], 0  ;;  %s2159_s0 = inlined_call_operand.hbm [shape: f32[16,32], index: 0, kind: input, shape index: {}]   ;;  %s2160_s1 = inlined_call_operand.hbm [shape: bf16[32,320], index: 1, kind: input, shape index: {}]   ;;  %s2161_s2 = inlined_call_operand.vmem [shape: f32[1,32], index: 2, kind: input, shape index: {}]   ;;  %s2162_s3 = inlined_call_operand.hbm [shape: f32[16,32], index: 3, kind: output, shape index: {}]  }
   0x1   :  { %10 = vsyncpa [#allocation3 + $0x1], 0 }
   0x2   :  { %11 = vsyncpa [#allocation6], 0 }
   0x3   :  { %12 = vsyncpa [#allocation4], 0 }
   0x4   :  { %14 = vsyncpa [#allocation4 + $0x1], 0  ;;  %s1793_s12 = smov 0   ;;  %s1795_s13 = smov 0  }
   0x5   :  { %s1797_s14 = smov 0   ;;  %s1799_s15 = smov 0  }
   0x6 LB: > { %s1814_s16 = sadd.s32 4294967295, %s1746_s15   ;;  %s1321_s17 = sadd.s32 4294967294, %s1746_s15   ;;  %s1746_s15 = sphi %s1799_s15, %s2182_s15   ;;  %s1742_s14 = sphi %s1797_s14, %s2181_s14   ;;  %s1738_s13 = sphi %s1795_s13, %s2180_s13   ;;  %s1734_s12 = sphi %s1793_s12, %s2179_s12  }
   0x7   : > { %p40_p0 = scmp.ne.s32.totalorder %s1738_s13, %s1734_s12  ;;  %p2163_p1 = scmp.eq.s32.totalorder %s1814_s16, 0 }
   0x8   : > { %p112_p3 = scmp.eq.s32.totalorder %s1321_s17, 1  ;;  %p1322_p5 = scmp.ge.s32.totalorder %s1746_s15, 1 }
   0x9   : > { %p1823_p4 = por %p2163_p1, %p40_p0  ;;  %p119_p7 = scmp.lt.s32.totalorder %s1746_s15, 3 }
   0xa   : > { %p1828_p6 = por %p112_p3, %p40_p0  ;;  %s1748_s21 = smov [#allocation5]  }
   0xb   : > { %s2166_s18 = scalar_select %p1823_p4, 1, 0 }
   0xc   : > { %s2167_s19 = scalar_select %p1828_p6, 1, 0 }
   0xd   : > { %p1833_p8 = pnand %p1322_p5, %p119_p7  ;;  %s131_s22 = sshll.u32 %s1748_s21, 4  ;;  %s1837_s22 = int_to_ptr.vmem [resolvable:$true] %s131_s22 }
   0xe   : > { %s1849_s24 = sadd.s32 1, %s1746_s15   ;;  %s27_s25 = sadd.s32 1, %s1742_s14 }
   0xf   : > { %s2168_s20 = scalar_select %p1833_p8, 1, 0 }
  0x10   : > { %p1507_p9 = pneg %p1833_p8  ;;  %s24_s26 = ssub.s32 %s1746_s15, %s1849_s24 }
  0x11   : > { %s1618_s29 = scalar_lea.hbm %s2160_s1, 768 }
  0x12   : > { %p1844_p11 = pnand %p1507_p9, %p2163_p1  ;;  %p1619_p12 = scmp.ne.s32.totalorder %s2160_s1, %s1618_s29 }
  0x13   : > { %p1625_p5 = scmp.lt.u32.totalorder %s1618_s29, %s2160_s1 }
  0x14   : > { %p1620_p13 = pneg %p1844_p11 }
  0x16   : > { %p1621_p0 = pnand %p1620_p13, %p1619_p12 }
  0x18   : > { %p1622_p3 = pneg %p1621_p0 }
  0x1a   : > { %p1627_p7 = pnand %p1625_p5, %p1622_p3 }
  0x1c   : > { %1630 = shalt.err (!%p1627_p7)
}
  0x1d   : > { %s1631_s7 = scalar_lea.vmem %s1837_s22, 768  ;;  %p1639_p2 = scmp.lt.s32.totalorder %s1837_s22, %s1837_s22 }
  0x1e   : > { %p1632_p9 = scmp.ne.s32.totalorder %s1837_s22, %s1631_s7  ;;  %p1640_p6 = scmp.lt.s32.totalorder %s1631_s7, %s1631_s7 }
  0x20   : > { %p1634_p10 = pnand %p1632_p9, %p1620_p13  ;;  %p1641_p4 = por %p1640_p6, %p1639_p2 }
  0x22   : > { %p1635_p1 = pneg %p1634_p10 }
  0x24   : > { %p1642_p8 = pnand %p1641_p4, %p1635_p1 }
  0x26   : > { %1645 = shalt.err (!%p1642_p8)
}
  0x27   : > { %s1749_s8 = smov 192   ;;  %s1750_s9 = smov 12  }
  0x28   : > { %1510 = dma.hbm_to_vmem [thread:$0]  (!%p1844_p11), %s2160_s1, 768, %s1837_s22, [#allocation6], %s1749_s8, %s1749_s8, %s1750_s9  }
  0x29   : > { %p25_p2 = scmp.eq.s32.totalorder %s24_s26, 0  ;;  %p34_p1 = scmp.ne.s32.totalorder %s1742_s14, %s1738_s13 }
  0x2a   : > { %p35_p4 = scmp.eq.s32.totalorder %s1746_s15, 0  ;;  %p1520_p6 = scmp.lt.s32.totalorder %s1746_s15, 2 }
  0x2b   : > { %s1880_s17 = scalar_select %p25_p2, %s1742_s14, %s27_s25  }
  0x2c   : > { %p36_p8 = por %p35_p4, %p34_p1  ;;  %p2170_p10 = scmp.eq.s32.totalorder %s1814_s16, 1 }
  0x2d   : > { %s148_s27 = sand.u32 1, %s1742_s14   ;;  %s1326_s28 = sshll.u32 %s1746_s15, 7 }
  0x2e   : > { %p1884_p12 = por %p2170_p10, %p34_p1  ;;  %s1325_s29 = sshll.u32 %s148_s27, 3 }
  0x2f   : > { %s1893_s4 = scalar_lea.hbm %s2159_s0, %s1326_s28  ;;  %s152_s22 = scalar_lea.vmem [#allocation2], %s1325_s29 }
  0x30   : > { %s159_s25 = sshll.u32 %s152_s22, 4  ;;  %p1895_p11 = pnand %p1520_p6, %p36_p8  ;;  %s1899_s25 = int_to_ptr.vmem [resolvable:$true] %s159_s25 }
  0x31   : > { %s149_s5 = scalar_lea.sflag [#allocation3], %s148_s27  ;;  %s1646_s6 = scalar_lea.hbm %s1893_s4, 128 }
  0x32   : > { %p1647_p13 = scmp.ne.s32.totalorder %s1893_s4, %s1646_s6  ;;  %p1648_p0 = pneg %p1895_p11 }
  0x33   : > { %s1651_s9 = scalar_lea.hbm %s2159_s0, 256  ;;  %p1652_p7 = scmp.lt.u32.totalorder %s1893_s4, %s2159_s0 }
  0x34   : > { %p1649_p3 = pnand %p1648_p0, %p1647_p13  ;;  %p1653_p9 = scmp.lt.u32.totalorder %s1651_s9, %s1646_s6 }
  0x35   : > { %p1655_p1 = scmp.lt.u32.totalorder %s1646_s6, %s1893_s4 }
  0x36   : > { %p1650_p5 = pneg %p1649_p3  ;;  %p1654_p2 = por %p1653_p9, %p1652_p7 }
  0x38   : > { %p1656_p4 = por %p1655_p1, %p1654_p2 }
  0x3a   : > { %p1657_p6 = pnand %p1656_p4, %p1650_p5 }
  0x3c   : > { %1660 = shalt.err (!%p1657_p6)
}
  0x3d   : > { %s1661_s27 = scalar_lea.vmem %s1899_s25, 128  ;;  %s1751_s28 = smov [#allocation2]  }
  0x3e   : > { %p1662_p8 = scmp.ne.s32.totalorder %s1899_s25, %s1661_s27  ;;  %s1666_s29 = sshll.u32 %s1751_s28, 4  ;;  %s1667_s29 = int_to_ptr.vmem [resolvable:$false] %s1666_s29 }
  0x3f   : > { %s1668_s23 = scalar_lea.vmem %s1667_s29, 256  ;;  %p1669_p3 = scmp.lt.s32.totalorder %s1899_s25, %s1667_s29 }
  0x40   : > { %p1664_p10 = pnand %p1662_p8, %p1648_p0  ;;  %p1670_p7 = scmp.lt.s32.totalorder %s1668_s23, %s1661_s27 }
  0x42   : > { %p1665_p13 = pneg %p1664_p10  ;;  %p1671_p9 = por %p1670_p7, %p1669_p3 }
  0x44   : > { %p1672_p2 = pnand %p1671_p9, %p1665_p13 }
  0x46   : > { %1675 = shalt.err (!%p1672_p2)
}
  0x47   : > { %1514 = dma.hbm_to_vmem [thread:$0]  (!%p1895_p11), %s1893_s4, 128, %s1899_s25, %s149_s5  }
  0x48   : > { %p2173_p5 = scmp.ne.s32.totalorder %s2168_s20, 0 }
  0x49   : > { %s1929_s30 = sand.u32 (!%p2173_p5), 1, %s1738_s13   ;;  %p2174_p0 = scmp.ne.s32.totalorder (!%p2173_p5), %s2166_s18, 0 }
  0x4a   : > { %168 = sbr.rel (%p2173_p5) target bundleno = 1803 (0x70b), region = 32  ;;  %s1328_s22 = sshll.u32 (!%p2173_p5), %s1929_s30, 3 }
  0x4b   : > { %s171_s6 = scalar_lea.sflag (!%p2173_p5), [#allocation3], %s1929_s30  ;;  %s174_s7 = scalar_lea.vmem (!%p2173_p5), [#allocation2], %s1328_s22 }
  0x51   : > { %1721 = dma.done.wait (%p2174_p0), %s171_s6, 128  }
  0x52   : > { %1723 = vsyncadd (%p2174_p0), %s171_s6, 4294967168  ;;  %p2175_p11 = scmp.eq.s32.totalorder %s1814_s16, 0 }
  0x54   : > { %1725 = dma.done.wait (%p2175_p11), [#allocation6], 768   ;;  %p2176_p1 = pmov %p2175_p11 }
  0x55   : > { %v1752_v0 = vmov 0   ;;  %v1578_v1 = vld [vmem:[#allocation5 + $0x4] ss:$12 sps:$4 sm:$0xff]   ;;  %v1580_v2 = vld [vmem:[#allocation5] ss:$12 sps:$4 sm:$0xff]   ;;  %vm244_vm0 = vcmask 261120  }
  0x56   : > { %1727 = vsyncadd (%p2176_p1), [#allocation6], 4294966528  ;;  %280 = vmatprep.mubr.bf16.mxu0 %v1752_v0  ;;  %248 = vmatprep.subr.bf16.mxu0 %v1578_v1  ;;  %v1581_v3 = vld [vmem:[#allocation5 + $0x1c] ss:$12 sps:$4 sm:$0xff]   ;;  %v1583_v4 = vld [vmem:[#allocation5 + $0x18] ss:$12 sps:$4 sm:$0xff]  }
  0x57   : > { %v202_v5 = vld [vmem:[%s174_s7] sm:$0xff]  ;;  %249 = vmatpush1.bf16.msra.mxu0 %v1580_v2  ;;  %v1753_v8 = vmov 0.0   ;;  %vm1754_vm1 = vmmov 0   ;;  %v1585_v9 = vld [vmem:[#allocation5 + $0x20] ss:$12 sps:$4 sm:$0xff]   ;;  %s1755_s18 = smov 92  }
  0x58   : > { %250 = vmatprep.subr.bf16.mxu0 %v1581_v3  ;;  %v203_v6 = vpack.c.bf16 %v202_v5, %v202_v5  ;;  %v1584_v7 = vld [vmem:[#allocation5 + $0x8] ss:$12 sps:$4 sm:$0xff]   ;;  %1395 = vmatprep.subr.bf16.mxu1 %v1753_v8  ;;  %s1756_s20 = smov 124   ;;  %s1757_s4 = smov 96   ;;  %vm336_vm2 = vcmask 31744   ;;  %vm383_vm3 = vcmask 64512  }
  0x59   : > { %1399 = vmatprep.mubr.msk.bf16.mxu1 %vm1754_vm1, %v1753_v8  ;;  %1396 = vmatpush3.bf16.msra.mxu1 %v1584_v7  ;;  %s1758_s25 = smov 88   ;;  %s1759_s26 = smov 120   ;;  %vm463_vm4 = vcmask 1043456  }
  0x5a   : > { %1397 = vmatprep.subr.bf16.mxu1 %v1753_v8  ;;  %s1760_s5 = smov 84   ;;  %s1761_s8 = smov 116  }
  0x5b   : > { %251 = vmatpush1.bf16.msra.mxu0 %v1583_v4  ;;  %s1762_s9 = smov 112   ;;  %s1763_s10 = smov 108  }
  0x5c   : > { %1403 = vmatprep.subr.bf16.mxu0 %v1753_v8  ;;  %s1764_s11 = smov 104   ;;  %s1765_s27 = smov 100  }
  0x5d   : > { %1398 = vmatpush3.bf16.msra.mxu1 %v1585_v9  ;;  %s1766_s28 = smov 32   ;;  %s1767_s29 = smov 80  }
  0x5e   : > { %1337 = vmatmul.mubr.msk.bf16.vlgmr.msra.gmra.mrb[0].mxu0 %vm244_vm0, %v203_v6  ;;  %1409 = vmatprep.subr.bf16.mxu1 %v1753_v8  ;;  %s1768_s23 = smov 76   ;;  %s1769_s6 = smov 72  }
  0x5f   : > { %1405 = vmatprep.mubr.msk.bf16.mxu0 %vm1754_vm1, %v1753_v8  ;;  %s1770_s7 = smov 68  }
  0x60   : > { %1400 = vmatmul.mubr.msk.bf16.vlgmr.msra.gmra.mrb[0].mxu1 %vm244_vm0, %v203_v6 }
  0x61   : > { %1411 = vmatprep.mubr.msk.bf16.mxu1 %vm1754_vm1, %v1753_v8 }
 0x131   : > { %v282_v10 = vpop.f32.mrb[0].mxu0 }
 0x132   : > { %v1955_v11 = vpack.c.bf16 %v282_v10, %v282_v10  ;;  %v1957_v12 = vpop.f32.mrb[1].mxu0 }
 0x133   : > { %v286_v13 = vpop.f32.mrb[2].mxu0  ;;  %v1980_v20 = vpop.f32.mrb[0].mxu1 }
 0x134   : > { %398 = vrot.lane.b32.xlu0 %v1955_v11, %s1755_s18  ;;  %v287_v14 = vpop.f32.mrb[3].mxu0  ;;  %v1401_v21 = vpop.f32.mrb[1].mxu1  ;;  %s1771_s18 = smov 64  }
 0x135   : > { %v326_v22 = vpop.f32.mrb[2].mxu1 }
 0x136   : > { %v1402_v23 = vpop.f32.mrb[3].mxu1 }
 0x138   : > { %396 = vrot.lane.b32.xlu0 %v1955_v11, %s1756_s20 }
 0x13c   : > { %334 = vrot.lane.b32.xlu0 %v1955_v11, %s1757_s4 }
 0x140   : > { %557 = vrot.lane.b32.xlu0 %v1955_v11, %s1758_s25  ;;  %s1357_s25 = sshll.u32 %s1814_s16, 7  ;;  %s1228_s16 = scalar_lea.sflag [#allocation4], %s1929_s30 }
 0x144   : > { %555 = vrot.lane.b32.xlu0 %v1955_v11, %s1759_s26  ;;  %s200_s26 = scalar_lea.vmem [#allocation7], %s1328_s22 }
 0x148   : > { %666 = vrot.lane.b32.xlu0 %v1955_v11, %s1760_s5  ;;  %s1241_s5 = sshll.u32 %s200_s26, 4  ;;  %s2116_s5 = int_to_ptr.vmem [resolvable:$true] %s1241_s5 }
 0x149   : > { %s1676_s22 = scalar_lea.vmem %s2116_s5, 128 }
 0x14a   : > { %p1677_p4 = scmp.ne.s32.totalorder %s2116_s5, %s1676_s22 }
 0x14c   : > { %664 = vrot.lane.b32.xlu0 %v1955_v11, %s1761_s8  ;;  %p1678_p6 = pnand %p1677_p4, %p1884_p12 }
 0x14e   : > { %p1679_p8 = pneg %p1678_p6 }
 0x150   : > { %776 = vrot.lane.b32.xlu0 %v1955_v11, %s1762_s9 }
 0x154   : > { %887 = vrot.lane.b32.xlu0 %v1955_v11, %s1763_s10  ;;  %s2114_s10 = scalar_lea.hbm %s2162_s3, %s1357_s25 }
 0x158   : > { %998 = vrot.lane.b32.xlu0 %v1955_v11, %s1764_s11  ;;  %s1772_s11 = smov [#allocation7]  }
 0x15c   : > { %1107 = vrot.lane.b32.xlu0 %v1955_v11, %s1765_s27  ;;  %s1680_s27 = sshll.u32 %s1772_s11, 4  ;;  %s1681_s27 = int_to_ptr.vmem [resolvable:$false] %s1680_s27 }
 0x15d   : > { %p1683_p10 = scmp.lt.s32.totalorder %s2116_s5, %s1681_s27 }
 0x1a6   : > { %v399_v15 = vpop.permute.xlu0 %398 }
 0x1a7   : > { %v404_v16 = vsel %vm336_vm2, %v399_v15, 0 }
 0x1a8   : > { %1410 = vmatpush3.bf16.xpose.msra.mxu1 %v404_v16 }
 0x1a9   : > { %1421 = vmatprep.subr.bf16.mxu1 %v1753_v8 }
 0x1aa   : > { %v397_v17 = vpop.permute.xlu0 %396 }
 0x1ae   : > { %v335_v18 = vpop.permute.xlu0 %334 }
 0x1af   : > { %v341_v19 = vsel %vm336_vm2, %v335_v18, 0  ;;  %1412 = vmatmul.mubr.msk.bf16.vlgmr.msra.gmra.mrb[4].mxu1 %vm336_vm2, %v397_v17 }
 0x1b0   : > { %1404 = vmatpush3.bf16.xpose.msra.mxu0 %v341_v19  ;;  %1423 = vmatprep.mubr.msk.bf16.mxu1 %vm1754_vm1, %v1753_v8 }
 0x1b1   : > { %1415 = vmatprep.subr.bf16.mxu0 %v1753_v8 }
 0x1b2   : > { %v558_v42 = vpop.permute.xlu0 %557 }
 0x1b3   : > { %v563_v47 = vsel %vm336_vm2, %v558_v42, 0 }
 0x1b6   : > { %v556_v46 = vpop.permute.xlu0 %555 }
 0x1b7   : > { %1406 = vmatmul.mubr.msk.bf16.vlgmr.msra.gmra.mrb[4].mxu0 %vm336_vm2, %v1955_v11 }
 0x1b8   : > { %1417 = vmatprep.mubr.msk.bf16.mxu0 %vm1754_vm1, %v1753_v8 }
 0x1ba   : > { %v667_v48 = vpop.permute.xlu0 %666 }
 0x1bb   : > { %v672_v49 = vsel %vm336_vm2, %v667_v48, 0 }
 0x1be   : > { %v665_v51 = vpop.permute.xlu0 %664 }
 0x1c2   : > { %v777_v54 = vpop.permute.xlu0 %776 }
 0x1c6   : > { %v888_v57 = vpop.permute.xlu0 %887 }
 0x1ca   : > { %v999_v60 = vpop.permute.xlu0 %998 }
 0x1ce   : > { %v1108_v62 = vpop.permute.xlu0 %1107 }
 0x282   : > { %v440_v24 = vpop.f32.mrb[4].mxu1 }
 0x283   : > { %v1413_v25 = vpop.f32.mrb[5].mxu1  ;;  %v446_v26 = vsel %vm383_vm3, %v440_v24, -inf }
 0x284   : > { %447 = vmax.xlane.f32.xlu1 %v446_v26  ;;  %v443_v27 = vpop.f32.mrb[6].mxu1 }
 0x285   : > { %v1414_v28 = vpop.f32.mrb[7].mxu1 }
 0x28a   : > { %v1985_v29 = vpop.f32.mrb[4].mxu0 }
 0x28b   : > { %v1407_v30 = vpop.f32.mrb[5].mxu0  ;;  %v384_v38 = vsel %vm383_vm3, %v1985_v29, -inf }
 0x28c   : > { %v380_v31 = vpop.f32.mrb[6].mxu0 }
 0x28d   : > { %v1408_v32 = vpop.f32.mrb[7].mxu0 }
 0x311   : > { %v448_v33 = vpop.xlane.xlu1 %447 }
 0x312   : > { %v449_v34 = vsub.f32 %v440_v24, %v448_v33 }
 0x314   : > { %v450_v35 = vmul.f32 1.442695, %v449_v34 }
 0x316   : > { %1586 = vpow2.f32 %v450_v35 }
 0x320   : > { %v1587_v36 = vpop.eup %1586 }
 0x321   : > { %v452_v37 = vsel %vm383_vm3, %v1587_v36, 0.0 }
 0x322   : > { %453 = vadd.xlane.f32.xlu1 %v452_v37 }
 0x333   : > { %458 = vrot.lane.b32.xlu1 %v1955_v11, %s1766_s28 }
 0x337   : > { %778 = vrot.lane.b32.xlu1 %v1955_v11, %s1767_s29 }
 0x33b   : > { %889 = vrot.lane.b32.xlu1 %v1955_v11, %s1768_s23 }
 0x33f   : > { %1000 = vrot.lane.b32.xlu1 %v1955_v11, %s1769_s6 }
 0x343   : > { %1109 = vrot.lane.b32.xlu1 %v1955_v11, %s1770_s7 }
 0x367   : > { %385 = vmax.xlane.f32.xlu1 %v384_v38 }
 0x3af   : > { %v454_v39 = vpop.xlane.xlu1 %453 }
 0x3b0   : > { %1588 = vrcp.f32 %v454_v39 }
 0x3b3   : > { %v459_v40 = vpop.permute.xlu1 %458 }
 0x3b4   : > { %v465_v41 = vsel %vm463_vm4, %v459_v40, 0 }
 0x3b5   : > { %1416 = vmatpush3.bf16.msra.mxu0 %v465_v41 }
 0x3b6   : > { %1427 = vmatprep.subr.bf16.mxu0 %v1753_v8 }
 0x3b7   : > { %v779_v50 = vpop.permute.xlu1 %778 }
 0x3b8   : > { %v784_v52 = vsel %vm336_vm2, %v779_v50, 0 }
 0x3ba   : > { %v1589_v43 = vpop.eup %1588 }
 0x3bb   : > { %v456_v44 = vmul.f32 %v1589_v43, %v1587_v36  ;;  %v890_v53 = vpop.permute.xlu1 %889 }
 0x3bc   : > { %v895_v55 = vsel %vm336_vm2, %v890_v53, 0 }
 0x3bd   : > { %v457_v45 = vpack.c.bf16 %v456_v44, %v456_v44 }
 0x3bf   : > { %1418 = vmatmul.mubr.msk.bf16.vlgmr.msra.gmra.mrb[8].mxu0 %vm383_vm3, %v457_v45  ;;  %v1001_v56 = vpop.permute.xlu1 %1000 }
 0x3c0   : > { %1428 = vmatpush3.bf16.xpose.msra.mxu0 %v563_v47  ;;  %1429 = vmatprep.mubr.msk.bf16.mxu0 %vm1754_vm1, %v1753_v8  ;;  %v1006_v58 = vsel %vm336_vm2, %v1001_v56, 0 }
 0x3c1   : > { %1439 = vmatprep.subr.bf16.mxu0 %v1753_v8 }
 0x3c3   : > { %v1110_v59 = vpop.permute.xlu1 %1109 }
 0x3c4   : > { %v1115_v61 = vsel %vm336_vm2, %v1110_v59, 0 }
 0x3c7   : > { %1430 = vmatmul.mubr.msk.bf16.vlgmr.msra.gmra.mrb[12].mxu0 %vm336_vm2, %v556_v46 }
 0x3c8   : > { %1440 = vmatpush3.bf16.xpose.msra.mxu0 %v672_v49  ;;  %1441 = vmatprep.mubr.msk.bf16.mxu0 %vm1754_vm1, %v1753_v8 }
 0x3c9   : > { %1451 = vmatprep.subr.bf16.mxu0 %v1753_v8 }
 0x3cf   : > { %1442 = vmatmul.mubr.msk.bf16.vlgmr.msra.gmra.mrb[16].mxu0 %vm336_vm2, %v665_v51 }
 0x3d0   : > { %1452 = vmatpush3.bf16.xpose.msra.mxu0 %v784_v52  ;;  %1453 = vmatprep.mubr.msk.bf16.mxu0 %vm1754_vm1, %v1753_v8  ;;  %v331_v52 = vpack.c.bf16 %v1957_v12, %v1957_v12 }
 0x3d1   : > { %1463 = vmatprep.subr.bf16.mxu0 %v1753_v8 }
 0x3d7   : > { %1454 = vmatmul.mubr.msk.bf16.vlgmr.msra.gmra.mrb[20].mxu0 %vm336_vm2, %v777_v54 }
 0x3d8   : > { %1464 = vmatpush3.bf16.xpose.msra.mxu0 %v895_v55  ;;  %1465 = vmatprep.mubr.msk.bf16.mxu0 %vm1754_vm1, %v1753_v8 }
 0x3d9   : > { %1475 = vmatprep.subr.bf16.mxu0 %v1753_v8 }
 0x3df   : > { %1466 = vmatmul.mubr.msk.bf16.vlgmr.msra.gmra.mrb[24].mxu0 %vm336_vm2, %v888_v57 }
 0x3e0   : > { %1476 = vmatpush3.bf16.xpose.msra.mxu0 %v1006_v58  ;;  %1477 = vmatprep.mubr.msk.bf16.mxu0 %vm1754_vm1, %v1753_v8 }
 0x3e1   : > { %1487 = vmatprep.subr.bf16.mxu0 %v1753_v8 }
 0x3e7   : > { %1478 = vmatmul.mubr.msk.bf16.vlgmr.msra.gmra.mrb[28].mxu0 %vm336_vm2, %v999_v60 }
 0x3e8   : > { %1488 = vmatpush3.bf16.xpose.msra.mxu0 %v1115_v61  ;;  %1489 = vmatprep.mubr.msk.bf16.mxu0 %vm1754_vm1, %v1753_v8 }
 0x3ef   : > { %1490 = vmatmul.mubr.msk.bf16.vlgmr.msra.gmra.mrb[32].mxu0 %vm336_vm2, %v1108_v62 }
 0x3f4   : > { %v386_v16 = vpop.xlane.xlu1 %385 }
 0x3f5   : > { %v387_v17 = vsub.f32 %v1985_v29, %v386_v16 }
 0x3f7   : > { %v388_v24 = vmul.f32 1.442695, %v387_v17 }
 0x3f9   : > { %1590 = vpow2.f32 %v388_v24 }
 0x403   : > { %v2036_v33 = vpop.eup %1590 }
 0x404   : > { %v390_v36 = vsel %vm383_vm3, %v2036_v33, 0.0 }
 0x492   : > { %v2028_v63 = vpop.f32.mrb[8].mxu0 }
 0x493   : > { %v1419_v0 = vpop.f32.mrb[9].mxu0 }
 0x494   : > { %v504_v1 = vpop.f32.mrb[10].mxu0 }
 0x495   : > { %v1420_v2 = vpop.f32.mrb[11].mxu0 }
 0x49a   : > { %v599_v3 = vpop.f32.mrb[12].mxu0 }
 0x49b   : > { %v1431_v4 = vpop.f32.mrb[13].mxu0  ;;  %v605_v5 = vsel %vm383_vm3, %v599_v3, -inf }
 0x49c   : > { %606 = vmax.xlane.f32.xlu0 %v605_v5  ;;  %v602_v6 = vpop.f32.mrb[14].mxu0 }
 0x49d   : > { %v1432_v7 = vpop.f32.mrb[15].mxu0 }
 0x4a2   : > { %v708_v9 = vpop.f32.mrb[16].mxu0 }
 0x4a3   : > { %v1443_v10 = vpop.f32.mrb[17].mxu0  ;;  %v714_v13 = vsel %vm383_vm3, %v708_v9, -inf }
 0x4a4   : > { %715 = vmax.xlane.f32.xlu0 %v714_v13  ;;  %v711_v14 = vpop.f32.mrb[18].mxu0 }
 0x4a5   : > { %v1444_v15 = vpop.f32.mrb[19].mxu0 }
 0x4aa   : > { %v820_v18 = vpop.f32.mrb[20].mxu0 }
 0x4ab   : > { %v1455_v19 = vpop.f32.mrb[21].mxu0  ;;  %v826_v21 = vsel %vm383_vm3, %v820_v18, -inf }
 0x4ac   : > { %827 = vmax.xlane.f32.xlu1 %v826_v21  ;;  %v823_v22 = vpop.f32.mrb[22].mxu0 }
 0x4ad   : > { %v1456_v23 = vpop.f32.mrb[23].mxu0 }
 0x4b2   : > { %v931_v25 = vpop.f32.mrb[24].mxu0 }
 0x4b3   : > { %v1467_v26 = vpop.f32.mrb[25].mxu0  ;;  %v937_v27 = vsel %vm383_vm3, %v931_v25, -inf }
 0x4b4   : > { %938 = vmax.xlane.f32.xlu0 %v937_v27  ;;  %v934_v28 = vpop.f32.mrb[26].mxu0 }
 0x4b5   : > { %v1468_v30 = vpop.f32.mrb[27].mxu0 }
 0x4ba   : > { %v1042_v31 = vpop.f32.mrb[28].mxu0 }
 0x4bb   : > { %v1479_v32 = vpop.f32.mrb[29].mxu0  ;;  %v1048_v29 = vsel %vm383_vm3, %v1042_v31, -inf }
 0x4bc   : > { %1049 = vmax.xlane.f32.xlu1 %v1048_v29  ;;  %v1045_v34 = vpop.f32.mrb[30].mxu0 }
 0x4bd   : > { %v1480_v35 = vpop.f32.mrb[31].mxu0 }
 0x4c0   : > { %391 = vadd.xlane.f32.xlu1 %v390_v36 }
 0x4c2   : > { %v1151_v37 = vpop.f32.mrb[32].mxu0 }
 0x4c3   : > { %v1491_v38 = vpop.f32.mrb[33].mxu0  ;;  %v1157_v39 = vsel %vm383_vm3, %v1151_v37, -inf }
 0x4c4   : > { %1158 = vmax.xlane.f32.xlu0 %v1157_v39  ;;  %v1154_v40 = vpop.f32.mrb[34].mxu0 }
 0x4c5   : > { %v1492_v41 = vpop.f32.mrb[35].mxu0 }
 0x529   : > { %v607_v42 = vpop.xlane.xlu0 %606 }
 0x52a   : > { %v608_v43 = vsub.f32 %v599_v3, %v607_v42 }
 0x52c   : > { %v609_v44 = vmul.f32 1.442695, %v608_v43 }
 0x52e   : > { %1592 = vpow2.f32 %v609_v44 }
 0x531   : > { %v716_v45 = vpop.xlane.xlu0 %715 }
 0x532   : > { %v717_v46 = vsub.f32 %v708_v9, %v716_v45  ;;  %v332_v9 = vpack.c.bf16 %v1980_v20, %v1980_v20  ;;  %v621_v20 = vsel %vm463_vm4, %v331_v52, 0 }
 0x534   : > { %v718_v47 = vmul.f32 1.442695, %v717_v46  ;;  %v1064_v44 = vsel %vm463_vm4, %v332_v9, 0 }
 0x536   : > { %1594 = vpow2.f32 %v718_v47 }
 0x538   : > { %v1593_v48 = vpop.eup %1592 }
 0x539   : > { %v611_v49 = vsel %vm383_vm3, %v1593_v48, 0.0  ;;  %v828_v53 = vpop.xlane.xlu1 %827 }
 0x53a   : > { %612 = vadd.xlane.f32.xlu0 %v611_v49  ;;  %v829_v54 = vsub.f32 %v820_v18, %v828_v53 }
 0x53c   : > { %v830_v56 = vmul.f32 1.442695, %v829_v54 }
 0x53e   : > { %1596 = vpow2.f32 %v830_v56 }
 0x540   : > { %v2042_v50 = vpop.eup %1594 }
 0x541   : > { %v720_v51 = vsel %vm383_vm3, %v2042_v50, 0.0  ;;  %v939_v55 = vpop.xlane.xlu0 %938 }
 0x542   : > { %721 = vadd.xlane.f32.xlu1 %v720_v51  ;;  %v940_v57 = vsub.f32 %v931_v25, %v939_v55 }
 0x544   : > { %v941_v61 = vmul.f32 1.442695, %v940_v57 }
 0x546   : > { %1598 = vpow2.f32 %v941_v61 }
 0x548   : > { %v1597_v12 = vpop.eup %1596 }
 0x549   : > { %v1050_v58 = vpop.xlane.xlu1 %1049  ;;  %v832_v2 = vsel %vm383_vm3, %v1597_v12, 0.0 }
 0x54a   : > { %v1051_v60 = vsub.f32 %v1042_v31, %v1050_v58 }
 0x54c   : > { %v1052_v0 = vmul.f32 1.442695, %v1051_v60 }
 0x54d   : > { %v392_v10 = vpop.xlane.xlu1 %391 }
 0x54e   : > { %1600 = vpow2.f32 %v1052_v0 }
 0x550   : > { %727 = vrot.lane.b32.xlu0 %v331_v52, %s1757_s4 }
 0x551   : > { %v1159_v59 = vpop.xlane.xlu0 %1158 }
 0x552   : > { %v1160_v62 = vsub.f32 %v1151_v37, %v1159_v59 }
 0x553   : > { %507 = vrot.lane.b32.xlu1 %v1955_v11, %s1771_s18  ;;  %v2051_v11 = vpop.eup %1598 }
 0x554   : > { %v1161_v1 = vmul.f32 1.442695, %v1160_v62  ;;  %v943_v4 = vsel %vm383_vm3, %v2051_v11, 0.0 }
 0x556   : > { %1602 = vpow2.f32 %v1161_v1 }
 0x557   : > { %1604 = vrcp.f32 %v392_v10 }
 0x558   : > { %v2053_v3 = vpop.eup %1600 }
 0x559   : > { %v1054_v6 = vsel %vm383_vm3, %v2053_v3, 0.0 }
 0x560   : > { %v2057_v5 = vpop.eup %1602 }
 0x561   : > { %v1163_v7 = vsel %vm383_vm3, %v2057_v5, 0.0  ;;  %v1605_v14 = vpop.eup %1604 }
 0x562   : > { %v394_v16 = vmul.f32 %v1605_v14, %v2036_v33 }
 0x564   : > { %v395_v19 = vpack.c.bf16 %v394_v16, %v394_v16 }
 0x56f   : > { %833 = vadd.xlane.f32.xlu0 %v832_v2 }
 0x573   : > { %944 = vadd.xlane.f32.xlu0 %v943_v4 }
 0x577   : > { %1055 = vadd.xlane.f32.xlu0 %v1054_v6  ;;  %1164 = vadd.xlane.f32.xlu1 %v1163_v7 }
 0x58d   : > { %838 = vrot.lane.b32.xlu0 %v331_v52, %s1771_s18 }
 0x591   : > { %949 = vrot.lane.b32.xlu0 %v331_v52, %s1766_s28  ;;  %s1682_s28 = scalar_lea.vmem %s1681_s27, 256 }
 0x592   : > { %p1684_p13 = scmp.lt.s32.totalorder %s1682_s28, %s1676_s22 }
 0x594   : > { %p1685_p3 = por %p1684_p13, %p1683_p10 }
 0x595   : > { %1170 = vrot.lane.b32.xlu0 %v332_v9, %s1757_s4 }
 0x596   : > { %p1686_p7 = pnand %p1685_p3, %p1679_p8 }
 0x5c7   : > { %v613_v13 = vpop.xlane.xlu0 %612 }
 0x5c8   : > { %1606 = vrcp.f32 %v613_v13 }
 0x5cb   : > { %v728_v23 = vpop.permute.xlu0 %727 }
 0x5cc   : > { %v733_v26 = vsel %vm463_vm4, %v728_v23, 0 }
 0x5cf   : > { %v722_v15 = vpop.xlane.xlu1 %721 }
 0x5d0   : > { %1608 = vrcp.f32 %v722_v15 }
 0x5d2   : > { %v1607_v21 = vpop.eup %1606 }
 0x5d3   : > { %v508_v17 = vpop.permute.xlu1 %507  ;;  %v615_v22 = vmul.f32 %v1607_v21, %v1593_v48 }
 0x5d4   : > { %v513_v18 = vsel %vm463_vm4, %v508_v17, 0 }
 0x5d5   : > { %1422 = vmatpush3.bf16.msra.mxu1 %v513_v18  ;;  %v616_v24 = vpack.c.bf16 %v615_v22, %v615_v22  ;;  %v1355_v18 = vld [vmem:[%s2161_s2] ss:$0 sm:$0xff] }
 0x5d6   : > { %1433 = vmatprep.subr.bf16.mxu1 %v1753_v8 }
 0x5d8   : > { %1424 = vmatmul.mubr.msk.bf16.vlgmr.msra.gmra.mrb[8].mxu1 %vm383_vm3, %v395_v19 }
 0x5d9   : > { %1434 = vmatpush3.bf16.msra.mxu1 %v621_v20  ;;  %1435 = vmatprep.mubr.msk.bf16.mxu1 %vm1754_vm1, %v1753_v8 }
 0x5da   : > { %1445 = vmatprep.subr.bf16.mxu1 %v1753_v8  ;;  %v1609_v25 = vpop.eup %1608 }
 0x5db   : > { %v724_v27 = vmul.f32 %v1609_v25, %v2042_v50 }
 0x5dd   : > { %v725_v28 = vpack.c.bf16 %v724_v27, %v724_v27 }
 0x5e0   : > { %1436 = vmatmul.mubr.msk.bf16.vlgmr.msra.gmra.mrb[12].mxu1 %vm383_vm3, %v616_v24 }
 0x5e1   : > { %1446 = vmatpush3.bf16.msra.mxu1 %v733_v26  ;;  %1447 = vmatprep.mubr.msk.bf16.mxu1 %vm1754_vm1, %v1753_v8 }
 0x5e2   : > { %1457 = vmatprep.subr.bf16.mxu1 %v1753_v8 }
 0x5e8   : > { %1448 = vmatmul.mubr.msk.bf16.vlgmr.msra.gmra.mrb[16].mxu1 %vm383_vm3, %v725_v28 }
 0x5e9   : > { %1459 = vmatprep.mubr.msk.bf16.mxu1 %vm1754_vm1, %v1753_v8 }
 0x5fc   : > { %v834_v30 = vpop.xlane.xlu0 %833 }
 0x5fd   : > { %1610 = vrcp.f32 %v834_v30 }
 0x600   : > { %v945_v31 = vpop.xlane.xlu0 %944 }
 0x601   : > { %1612 = vrcp.f32 %v945_v31 }
 0x604   : > { %v1056_v32 = vpop.xlane.xlu0 %1055  ;;  %v1165_v41 = vpop.xlane.xlu1 %1164 }
 0x605   : > { %1614 = vrcp.f32 %v1056_v32 }
 0x606   : > { %1616 = vrcp.f32 %v1165_v41 }
 0x607   : > { %v1611_v29 = vpop.eup %1610 }
 0x608   : > { %v836_v33 = vmul.f32 %v1611_v29, %v1597_v12  ;;  %v839_v34 = vpop.permute.xlu0 %838 }
 0x609   : > { %v844_v35 = vsel %vm463_vm4, %v839_v34, 0 }
 0x60a   : > { %1458 = vmatpush3.bf16.msra.mxu1 %v844_v35  ;;  %v837_v36 = vpack.c.bf16 %v836_v33, %v836_v33 }
 0x60b   : > { %1469 = vmatprep.subr.bf16.mxu1 %v1753_v8  ;;  %v1613_v37 = vpop.eup %1612 }
 0x60c   : > { %v950_v38 = vpop.permute.xlu0 %949  ;;  %v947_v40 = vmul.f32 %v1613_v37, %v2051_v11 }
 0x60d   : > { %v955_v39 = vsel %vm463_vm4, %v950_v38, 0  ;;  %1460 = vmatmul.mubr.msk.bf16.vlgmr.msra.gmra.mrb[20].mxu1 %vm383_vm3, %v837_v36 }
 0x60e   : > { %1470 = vmatpush3.bf16.msra.mxu1 %v955_v39  ;;  %1471 = vmatprep.mubr.msk.bf16.mxu1 %vm1754_vm1, %v1753_v8  ;;  %v948_v42 = vpack.c.bf16 %v947_v40, %v947_v40 }
 0x60f   : > { %1481 = vmatprep.subr.bf16.mxu1 %v1753_v8  ;;  %v1615_v43 = vpop.eup %1614 }
 0x610   : > { %v1058_v45 = vmul.f32 %v1615_v43, %v2053_v3  ;;  %v1171_v46 = vpop.permute.xlu0 %1170  ;;  %v1617_v48 = vpop.eup %1616 }
 0x611   : > { %v1176_v49 = vsel %vm463_vm4, %v1171_v46, 0  ;;  %v1167_v50 = vmul.f32 %v1617_v48, %v2057_v5 }
 0x612   : > { %v1059_v47 = vpack.c.bf16 %v1058_v45, %v1058_v45 }
 0x613   : > { %v1168_v51 = vpack.c.bf16 %v1167_v50, %v1167_v50 }
 0x615   : > { %1472 = vmatmul.mubr.msk.bf16.vlgmr.msra.gmra.mrb[24].mxu1 %vm383_vm3, %v948_v42 }
 0x616   : > { %1482 = vmatpush3.bf16.msra.mxu1 %v1064_v44  ;;  %1483 = vmatprep.mubr.msk.bf16.mxu1 %vm1754_vm1, %v1753_v8 }
 0x617   : > { %1493 = vmatprep.subr.bf16.mxu1 %v1753_v8 }
 0x61d   : > { %1484 = vmatmul.mubr.msk.bf16.vlgmr.msra.gmra.mrb[28].mxu1 %vm383_vm3, %v1059_v47 }
 0x61e   : > { %1494 = vmatpush3.bf16.msra.mxu1 %v1176_v49  ;;  %1495 = vmatprep.mubr.msk.bf16.mxu1 %vm1754_vm1, %v1753_v8 }
 0x625   : > { %1496 = vmatmul.mubr.msk.bf16.vlgmr.msra.gmra.mrb[32].mxu1 %vm383_vm3, %v1168_v51 }
 0x6ab   : > { %v549_v52 = vpop.f32.mrb[8].mxu1 }
 0x6ac   : > { %v550_v53 = vadd.f32 %v549_v52, %v2028_v63  ;;  %v1425_v54 = vpop.f32.mrb[9].mxu1 }
 0x6ad   : > { %v552_v55 = vpop.f32.mrb[10].mxu1 }
 0x6ae   : > { %v1426_v56 = vpop.f32.mrb[11].mxu1 }
 0x6b3   : > { %v657_v57 = vpop.f32.mrb[12].mxu1 }
 0x6b4   : > { %v663_v58 = vadd.f32 %v657_v57, %v550_v53  ;;  %v1437_v59 = vpop.f32.mrb[13].mxu1 }
 0x6b5   : > { %v660_v60 = vpop.f32.mrb[14].mxu1 }
 0x6b6   : > { %v1438_v61 = vpop.f32.mrb[15].mxu1 }
 0x6bb   : > { %v769_v62 = vpop.f32.mrb[16].mxu1 }
 0x6bc   : > { %v775_v0 = vadd.f32 %v769_v62, %v663_v58  ;;  %v1449_v1 = vpop.f32.mrb[17].mxu1 }
 0x6bd   : > { %v772_v8 = vpop.f32.mrb[18].mxu1 }
 0x6be   : > { %v1450_v12 = vpop.f32.mrb[19].mxu1 }
 0x6e0   : > { %v880_v2 = vpop.f32.mrb[20].mxu1 }
 0x6e1   : > { %v886_v11 = vadd.f32 %v880_v2, %v775_v0  ;;  %v1461_v3 = vpop.f32.mrb[21].mxu1 }
 0x6e2   : > { %v883_v4 = vpop.f32.mrb[22].mxu1 }
 0x6e3   : > { %v1462_v63 = vpop.f32.mrb[23].mxu1 }
 0x6e8   : > { %v991_v5 = vpop.f32.mrb[24].mxu1 }
 0x6e9   : > { %v997_v6 = vadd.f32 %v991_v5, %v886_v11  ;;  %v1473_v7 = vpop.f32.mrb[25].mxu1 }
 0x6ea   : > { %v994_v9 = vpop.f32.mrb[26].mxu1 }
 0x6eb   : > { %v1474_v10 = vpop.f32.mrb[27].mxu1 }
 0x6f0   : > { %v1100_v13 = vpop.f32.mrb[28].mxu1 }
 0x6f1   : > { %v1106_v14 = vadd.f32 %v1100_v13, %v997_v6  ;;  %v1485_v15 = vpop.f32.mrb[29].mxu1 }
 0x6f2   : > { %v1103_v16 = vpop.f32.mrb[30].mxu1 }
 0x6f3   : > { %v1486_v17 = vpop.f32.mrb[31].mxu1 }
 0x6f8   : > { %v1212_v19 = vpop.f32.mrb[32].mxu1 }
 0x6f9   : > { %v1218_v21 = vadd.f32 %v1212_v19, %v1106_v14  ;;  %v1497_v20 = vpop.f32.mrb[33].mxu1 }
 0x6fa   : > { %v1215_v22 = vpop.f32.mrb[34].mxu1 }
 0x6fb   : > { %v1225_v23 = vadd.f32 %v1355_v18, %v1218_v21  ;;  %v1498_v24 = vpop.f32.mrb[35].mxu1 }
 0x6fd   : > { %1226 = vst.msk [vmem:[%s200_s26] sm:$0xff] %vm244_vm0, %v1225_v23 }
 0x6fe   : > { %1689 = shalt.err (!%p1686_p7)
}
 0x6ff   : > { %s1690_s30 = scalar_lea.hbm %s2114_s10, 128  ;;  %s1694_s6 = scalar_lea.hbm %s2162_s3, 256 }
 0x700   : > { %p1691_p9 = scmp.ne.s32.totalorder %s2114_s10, %s1690_s30  ;;  %p1695_p0 = scmp.lt.u32.totalorder %s2114_s10, %s2162_s3 }
 0x701   : > { %p1696_p11 = scmp.lt.u32.totalorder %s1694_s6, %s1690_s30  ;;  %p1698_p4 = scmp.lt.u32.totalorder %s1690_s30, %s2114_s10 }
 0x702   : > { %p1692_p2 = pnand %p1691_p9, %p1884_p12 }
 0x703   : > { %p1697_p1 = por %p1696_p11, %p1695_p0 }
 0x704   : > { %p1693_p5 = pneg %p1692_p2 }
 0x705   : > { %p1699_p6 = por %p1698_p4, %p1697_p1 }
 0x707   : > { %p1700_p8 = pnand %p1699_p6, %p1693_p5 }
 0x709   : > { %1703 = shalt.err (!%p1700_p8)
}
 0x70a   : > { %1505 = dma.vmem_to_hbm [thread:$0]  (%p1884_p12), %s2116_s5, 128, %s2114_s10, %s1228_s16  }
 0x70b PF: > { %s1253_s20 = sand.u32 1, %s1734_s12   ;;  %p2177_p10 = scmp.ne.s32.totalorder %s2167_s19, 0 }
 0x70c   : > { %p2178_p13 = scmp.ge.s32.totalorder %s1746_s15, 2  ;;  %s1254_s4 = scalar_lea.sflag [#allocation4], %s1253_s20 }
 0x70e   : > { %p1516_p3 = pnand %p2178_p13, %p2177_p10 }
 0x710   : > { %1729 = dma.done.wait (!%p1516_p3), %s1254_s4, 128  }
 0x711   : > { %1731 = vsyncadd (!%p1516_p3), %s1254_s4, 4294967168  ;;  %p17_p7 = scmp.ge.s32.totalorder %s1849_s24, 4   ;;  %s2179_s12 = smov %s1738_s13 }
 0x712   : > { %s2180_s13 = smov %s1742_s14  ;;  %s2181_s14 = smov %s1880_s17 }
 0x713   : > { %s2182_s15 = smov %s1849_s24  ;;  %19 = sbr.rel (!%p17_p7) target bundleno = 6 (0x6), region = 81 }
 0x71a   :  { %1259 = vsyncpa [#allocation3], 1 }
 0x71b   :  { %1261 = vsyncpa [#allocation3 + $0x1], 1 }
 0x71c   :  { %1262 = vsyncpa [#allocation6], 1 }
 0x71d   :  { %1263 = vsyncpa [#allocation4], 1 }
 0x71e   :  { %1265 = vsyncpa [#allocation4 + $0x1], 1 }

</bundles_post_ra>
